<compile_context>
chip_gen: v7x
topology: tpu7x:2x2x1
jax: 0.10.0
libtpu: 0.0.40
codegen_flags: <defaults>
</compile_context>

<pallas_src>
import jax
import jax.numpy as jnp
from jax.experimental import pallas as pl
from jax.experimental.pallas import tpu as pltpu


def _aesthetic_kernel(x_ref, w_ref, b_ref, out_ref):
    # x_ref: (tile_b, 768) VMEM   w_ref: (1, 768) VMEM f32
    # b_ref: (1, 1) SMEM f32      out_ref: (tile_b, 1) f32
    x = x_ref[...].astype(jnp.float32)
    w = w_ref[...]                                           # (1, 768), f32

    # Both reductions reuse the same x vregs; one VPU mul each, XLU reduce.
    sum_sq = jnp.sum(x * x, axis=-1, keepdims=True)          # (tile_b, 1)
    xw = jnp.sum(x * w, axis=-1, keepdims=True)              # (tile_b, 1)

    # Zero-norm rows -> norm 1.  Keep the where-select (rsqrt(0)=inf is
    # produced and discarded; do NOT replace with arithmetic masking).
    inv_norm = jnp.where(sum_sq == 0.0, jnp.float32(1.0), jax.lax.rsqrt(sum_sq))

    out_ref[...] = (xw * inv_norm + b_ref[0, 0]).astype(out_ref.dtype)


def fold_params(params):
    """Fold the five affine Linear layers into one 768 -> 1 affine map (f32)."""
    w, b = params[0]
    w = w.astype(jnp.float32)
    b = b.astype(jnp.float32)
    for wi, bi in params[1:]:
        wi = wi.astype(jnp.float32)
        bi = bi.astype(jnp.float32)
        w = w @ wi            # (768, dout)
        b = b @ wi + bi       # (1, dout)
    return w, b               # (768, 1), (1, 1)


def aesthetic_scorer(image_features, params, *, tile_b=1024):
    """image_features: [B, 768] (f32 or bf16) -> prediction [B, 1] float32."""
    B, D = image_features.shape
    x = image_features
    w_eff, b_eff = fold_params(params)
    w_row = w_eff.T                      # (1, 768) — broadcast to lanes in-kernel

    # Row-tile alignment: 8 sublanes for 4-byte dtypes, 16 for bf16, etc.
    itemsize = jnp.dtype(x.dtype).itemsize
    row_align = max(8, 32 // max(1, itemsize))
    b_aligned = pl.cdiv(B, row_align) * row_align

    # Clamp the requested tile to the (aligned) batch, keep it aligned.
    tile_b = max(row_align, min(int(tile_b), b_aligned))
    tile_b = (tile_b // row_align) * row_align
    # Keep the grid >= 2 blocks when the batch allows, so both v7x
    # TensorCores get work ("parallel" grid axis).
    if b_aligned >= 2 * row_align and pl.cdiv(b_aligned, tile_b) < 2:
        tile_b = max(row_align,
                     pl.cdiv(b_aligned // 2, row_align) * row_align)

    num_tiles = pl.cdiv(B, tile_b)

    # Raise the scoped-VMEM limit only if the double-buffered input block
    # would overflow the smallest default (v5e: 16 MiB scoped).
    in_block_bytes = tile_b * D * itemsize
    vmem_needed = 2 * in_block_bytes + (1 << 20)
    compiler_kwargs = dict(dimension_semantics=("parallel",))
    if vmem_needed > (12 << 20):
        compiler_kwargs["vmem_limit_bytes"] = int(min(vmem_needed + (4 << 20),
                                                      100 << 20))

    # NOTE: no jnp.pad — Pallas masks the partial boundary block; OOB input
    # rows are unspecified but only ever influence output rows >= B, which
    # are never written back.
    out = pl.pallas_call(
        _aesthetic_kernel,
        out_shape=jax.ShapeDtypeStruct((B, 1), jnp.float32),
        grid_spec=pltpu.PrefetchScalarGridSpec(
            num_scalar_prefetch=0,
            grid=(num_tiles,),
            in_specs=[
                pl.BlockSpec((tile_b, D), lambda i: (i, 0)),
                pl.BlockSpec((1, D), lambda i: (0, 0)),
                pl.BlockSpec(memory_space=pltpu.MemorySpace.SMEM),
            ],
            out_specs=pl.BlockSpec((tile_b, 1), lambda i: (i, 0)),
        ),
        compiler_params=pltpu.CompilerParams(**compiler_kwargs),
    )(x, w_row, b_eff)
    return out


def make_params(key):
    """Deterministic synthetic weights matching MLP(768) layer shapes."""
    dims = [(768, 1024), (1024, 128), (128, 64), (64, 16), (16, 1)]
    params = []
    for li, (din, dout) in enumerate(dims):
        kw, kb = jax.random.split(jax.random.fold_in(key, li))
        scale = 1.0 / jnp.sqrt(jnp.float32(din))
        w = jax.random.normal(kw, (din, dout), jnp.float32) * scale
        b = jax.random.normal(kb, (1, dout), jnp.float32) * 0.01
        params.append((w, b))
    return params


def reference(image_features, params):
    """Layer-by-layer reference (matches the PyTorch forward)."""
    x = image_features.astype(jnp.float32)
    l2 = jnp.linalg.norm(x, ord=2, axis=-1, keepdims=True)
    l2 = jnp.where(l2 == 0.0, 1.0, l2)
    x = x / l2
    for w, b in params:
        x = x @ w + b
    return x


if __name__ == "__main__":
    key = jax.random.PRNGKey(0)
    k_feat, k_param = jax.random.split(key)

    B, D = 8, 768  # CLIP ViT-L/14 embedding dim
    image_features = jax.random.normal(k_feat, (B, D), jnp.float32)
    # Include one all-zero row to exercise the zero-norm -> 1 path.
    image_features = image_features.at[0].set(0.0)
    params = make_params(k_param)

    pred = aesthetic_scorer(image_features, params)
    pred = jax.block_until_ready(pred)

    ref = reference(image_features, params)
    assert pred.shape == (B, 1)
    assert jnp.allclose(pred, ref, atol=1e-3, rtol=1e-3), "mismatch vs reference"

    print("KERNEL_OK")
</pallas_src>

<mosaic_0001>
module attributes {stable_mosaic.version = 11 : i64} {
  func.func @_aesthetic_kernel(%arg0: i32, %arg1: memref<8x768xf32, #tpu.memory_space<vmem>>, %arg2: memref<1x768xf32, #tpu.memory_space<vmem>>, %arg3: memref<1x1xf32, #tpu.memory_space<smem>>, %arg4: memref<8x1xf32, #tpu.memory_space<vmem>>) attributes {dimension_semantics = [#tpu.dimension_semantics<parallel>], iteration_bounds = array<i64: 1>, scalar_prefetch = 0 : i64, scratch_operands = 0 : i64, tpu.core_type = #tpu.core_type<tc>, window_params = [{transform_indices = @transform_0, window_bounds = array<i64: 8, 768>}, {pipeline_mode = #tpu.pipeline_mode<synchronous>, transform_indices = @transform_1, window_bounds = array<i64: 1, 768>}, {transform_indices = @transform_2, window_bounds = array<i64: 1, 1>}, {transform_indices = @transform_3, window_bounds = array<i64: 8, 1>}]} {
    %c0 = arith.constant 0 : index
    %c0_0 = arith.constant 0 : index
    %0 = vector.load %arg1[%c0, %c0_0] : memref<8x768xf32, #tpu.memory_space<vmem>>, vector<8x768xf32>
    %c0_1 = arith.constant 0 : index
    %c0_2 = arith.constant 0 : index
    %1 = vector.load %arg2[%c0_1, %c0_2] : memref<1x768xf32, #tpu.memory_space<vmem>>, vector<1x768xf32>
    %2 = arith.mulf %0, %0 : vector<8x768xf32>
    %cst = arith.constant dense<0.000000e+00> : vector<8xf32>
    %3 = vector.multi_reduction <add>, %2, %cst [1] : vector<8x768xf32> to vector<8xf32>
    %4 = vector.shape_cast %3 : vector<8xf32> to vector<8x1xf32>
    %5 = vector.broadcast %1 : vector<1x768xf32> to vector<8x768xf32>
    %6 = arith.mulf %0, %5 : vector<8x768xf32>
    %cst_3 = arith.constant dense<0.000000e+00> : vector<8xf32>
    %7 = vector.multi_reduction <add>, %6, %cst_3 [1] : vector<8x768xf32> to vector<8xf32>
    %8 = vector.shape_cast %7 : vector<8xf32> to vector<8x1xf32>
    %cst_4 = arith.constant 0.000000e+00 : f32
    %9 = vector.broadcast %cst_4 : f32 to vector<8x1xf32>
    %10 = arith.cmpf oeq, %4, %9 : vector<8x1xf32>
    %11 = math.rsqrt %4 : vector<8x1xf32>
    %cst_5 = arith.constant 1.000000e+00 : f32
    %12 = vector.broadcast %cst_5 : f32 to vector<8x1xf32>
    %13 = arith.select %10, %12, %11 : vector<8x1xi1>, vector<8x1xf32>
    %14 = arith.mulf %8, %13 : vector<8x1xf32>
    %c0_6 = arith.constant 0 : index
    %c0_7 = arith.constant 0 : index
    %15 = memref.load %arg3[%c0_6, %c0_7] : memref<1x1xf32, #tpu.memory_space<smem>>
    %16 = vector.broadcast %15 : f32 to vector<8x1xf32>
    %17 = arith.addf %14, %16 : vector<8x1xf32>
    %c0_8 = arith.constant 0 : index
    %c0_9 = arith.constant 0 : index
    %18 = vector.load %arg4[%c0_8, %c0_9] : memref<8x1xf32, #tpu.memory_space<vmem>>, vector<8x1xf32>
    tpu.vector_store %arg4[%c0_8, %c0_9], %17 {strides = array<i32>} : memref<8x1xf32, #tpu.memory_space<vmem>>, vector<8x1xf32>,
    return
  }
  func.func @transform_0(%arg0: i32) -> (i32, i32) {
    %c0_i32 = arith.constant 0 : i32
    %c0_i32_0 = arith.constant 0 : i32
    return %arg0, %c0_i32 : i32, i32
  }
  func.func @transform_1(%arg0: i32) -> (i32, i32) {
    %c0_i32 = arith.constant 0 : i32
    %c0_i32_0 = arith.constant 0 : i32
    %c0_i32_1 = arith.constant 0 : i32
    return %c0_i32, %c0_i32_0 : i32, i32
  }
  func.func @transform_2(%arg0: i32) -> (i32, i32) {
    %c0_i32 = arith.constant 0 : i32
    %c0_i32_0 = arith.constant 0 : i32
    %c0_i32_1 = arith.constant 0 : i32
    return %c0_i32, %c0_i32_0 : i32, i32
  }
  func.func @transform_3(%arg0: i32) -> (i32, i32) {
    %c0_i32 = arith.constant 0 : i32
    %c0_i32_0 = arith.constant 0 : i32
    return %arg0, %c0_i32 : i32, i32
  }
}

</mosaic_0001>

<bundles_post_ra>
// kernel: tpu_custom_call.1
= control target key start
LH: loop header
LB: loop body
LE: loop exit
PB: predicated region body
PF: predicated region fallthrough
CT: control target
= control target key end

     0   :  { %9 = vsyncpa [#allocation4], 0  ;;  %s132_s12 = smov [#allocation3]   ;;  %s174_s0 = inlined_call_operand.hbm [shape: f32[8,768], index: 0, kind: input, shape index: {}]   ;;  %s175_s1 = inlined_call_operand.vmem [shape: f32[1,768], index: 1, kind: input, shape index: {}]   ;;  %s176_s2 = inlined_call_operand.<no memory space> [shape: f32[1,1], index: 2, kind: input, shape index: {}]   ;;  %s177_s3 = inlined_call_operand.vmem [shape: f32[8,1], index: 3, kind: output, shape index: {}]  }
   0x1   :  { %s16_s13 = sshll.u32 %s132_s12, 4  ;;  %s108_s16 = scalar_lea.hbm %s174_s0, 768  ;;  %s17_s13 = int_to_ptr.vmem [resolvable:$true] %s16_s13 }
   0x2   :  { %p109_p0 = scmp.ne.s32.totalorder %s174_s0, %s108_s16  ;;  %p112_p1 = scmp.lt.u32.totalorder %s108_s16, %s174_s0 }
   0x4   :  { %p114_p2 = pnand %p112_p1, %p109_p0 }
   0x6   :  { %117 = shalt.err (!%p114_p2)
}
   0x7   :  { %s118_s21 = scalar_lea.vmem %s17_s13, 768  ;;  %p123_p4 = scmp.lt.s32.totalorder %s17_s13, %s17_s13 }
   0x8   :  { %p119_p3 = scmp.ne.s32.totalorder %s17_s13, %s118_s21  ;;  %p124_p5 = scmp.lt.s32.totalorder %s118_s21, %s118_s21 }
   0xa   :  { %p125_p6 = por %p124_p5, %p123_p4 }
   0xc   :  { %p126_p7 = pnand %p125_p6, %p119_p3 }
   0xe   :  { %129 = shalt.err (!%p126_p7)
}
   0xf   :  { %19 = dma.hbm_to_vmem [thread:$0]  %s174_s0, 768, %s17_s13, [#allocation4]  }
  0x10   :  { %130 = dma.done.wait [#allocation4], 768  }
  0x11   :  { %131 = vsyncadd [#allocation4], 4294966528  ;;  %v48_v0 = vlaneseq  ;;  %v27_v5 = vld [vmem:[#allocation3] sm:$0xff]  ;;  %v28_v6 = vld [vmem:[#allocation3 + $0x8] sm:$0xff]  ;;  %v96_v47 = vstv %s176_s2  ;;  %vm98_vm1 = vcmask 7168  }
  0x12   :  { %v29_v7 = vld [vmem:[#allocation3 + $0x10] sm:$0xff]  ;;  %v30_v10 = vld [vmem:[#allocation3 + $0x18] sm:$0xff]  ;;  %v31_v11 = vld [vmem:[#allocation3 + $0x20] sm:$0xff]  ;;  %v34_v12 = vmul.f32 %v27_v5, %v27_v5  ;;  %v35_v13 = vmul.f32 %v28_v6, %v28_v6 }
  0x13   :  { %v49_v1 = vshrl.u32 %v48_v0, 7  ;;  %v36_v14 = vmul.f32 %v29_v7, %v29_v7  ;;  %v37_v15 = vmul.f32 %v30_v10, %v30_v10  ;;  %v33_v16 = vld [vmem:[%s175_s1] sm:$0x3f]  ;;  %v32_v18 = vld [vmem:[#allocation3 + $0x28] sm:$0xff]  ;;  %v38_v23 = vmul.f32 %v31_v11, %v31_v11 }
  0x14   :  { %v40_v19 = vadd.f32 %v35_v13, %v34_v12  ;;  %v39_v30 = vmul.f32 %v32_v18, %v32_v18 }
  0x15   :  { %v50_v2 = vsub.s32 0, %v49_v1  ;;  %v54_v3 = vsub.s32 1, %v49_v1  ;;  %v58_v4 = vsub.s32 2, %v49_v1  ;;  %v62_v8 = vsub.s32 3, %v49_v1 }
  0x16   :  { %v66_v9 = vsub.s32 4, %v49_v1  ;;  %v70_v17 = vsub.s32 5, %v49_v1  ;;  %v41_v26 = vadd.f32 %v40_v19, %v36_v14 }
  0x17   :  { %v51_v20 = vrot.slane %v33_v16, %v50_v2  ;;  %v55_v21 = vrot.slane %v33_v16, %v54_v3  ;;  %v59_v22 = vrot.slane %v33_v16, %v58_v4  ;;  %v63_v24 = vrot.slane %v33_v16, %v62_v8 }
  0x18   :  { %v67_v25 = vrot.slane %v33_v16, %v66_v9  ;;  %v42_v31 = vadd.f32 %v41_v26, %v37_v15  ;;  %v71_v32 = vrot.slane %v33_v16, %v70_v17 }
  0x19   :  { %v78_v27 = vmul.f32 %v51_v20, %v27_v5  ;;  %v79_v28 = vmul.f32 %v55_v21, %v28_v6  ;;  %v80_v29 = vmul.f32 %v59_v22, %v29_v7  ;;  %v81_v33 = vmul.f32 %v63_v24, %v30_v10 }
  0x1a   :  { %v43_v35 = vadd.f32 %v42_v31, %v38_v23  ;;  %v82_v36 = vmul.f32 %v67_v25, %v31_v11  ;;  %v83_v39 = vmul.f32 %v71_v32, %v32_v18 }
  0x1b   :  { %v84_v34 = vadd.f32 %v79_v28, %v78_v27 }
  0x1c   :  { %v44_v38 = vadd.f32 %v43_v35, %v39_v30 }
  0x1d   :  { %v85_v37 = vadd.f32 %v84_v34, %v80_v29 }
  0x1e   :  { %45 = vadd.xlane.f32.xlu0 %v44_v38 }
  0x1f   :  { %v86_v40 = vadd.f32 %v85_v37, %v81_v33 }
  0x21   :  { %v87_v41 = vadd.f32 %v86_v40, %v82_v36 }
  0x23   :  { %v88_v42 = vadd.f32 %v87_v41, %v83_v39 }
  0x25   :  { %89 = vadd.xlane.f32.xlu0 %v88_v42 }
  0xab   :  { %v46_v43 = vpop.xlane.xlu0 %45 }
  0xac   :  { %106 = vrsqrt.f32 %v46_v43  ;;  %vm91_vm0 = vcmp.eq.f32.partialorder %v46_v43, 0.0 }
  0xb2   :  { %v90_v44 = vpop.xlane.xlu0 %89 }
  0xb6   :  { %v107_v45 = vpop.eup %106 }
  0xb7   :  { %v93_v46 = vsel %vm91_vm0, 1.0, %v107_v45 }
  0xb8   :  { %v94_v48 = vmul.f32 %v93_v46, %v90_v44 }
  0xba   :  { %v97_v49 = vadd.f32 %v96_v47, %v94_v48 }
  0xbc   :  { %99 = vst.msk [vmem:[%s177_s3] sm:$0xff] %vm98_vm1, %v97_v49 }
  0xbd   :  { %104 = vsyncpa [#allocation4], 1 }

</bundles_post_ra>
